<compile_context>
chip_gen: v7x
topology: tpu7x:2x2x1
jax: 0.10.0
libtpu: 0.0.40
codegen_flags: <defaults>
</compile_context>

<pallas_src>
import math

import jax
import jax.numpy as jnp
from jax.experimental import pallas as pl
from jax.experimental.pallas import tpu as pltpu


def _round_up(x: int, m: int) -> int:
    return ((x + m - 1) // m) * m


def _cdiv(a: int, b: int) -> int:
    return -(-a // b)


def _largest_aligned_divisor(total: int, align: int, cap: int) -> int:
    """Largest multiple of `align` that divides `total` and is <= cap (>= align)."""
    best = align
    m = align
    limit = min(cap, total)
    while m <= limit:
        if total % m == 0:
            best = m
        m += align
    return best


def _tpu_generation_info():
    """Best-effort (vmem_capacity_bytes, tensorcores_per_chip) with safe defaults."""
    vmem_cap = 128 << 20
    num_cores = 1
    try:
        info = pltpu.get_tpu_info()
        vmem_cap = int(getattr(info, "vmem_capacity_bytes", vmem_cap))
    except Exception:
        pass
    try:
        kind = jax.devices()[0].device_kind.lower()
        if ("v4" in kind) or ("v5p" in kind) or ("7" in kind):
            num_cores = 2                       # megacore / dual-TensorCore parts
        if "7" in kind:
            vmem_cap = min(vmem_cap, 64 << 20)  # v7x: 64 MiB VMEM per TC
    except Exception:
        pass
    return vmem_cap, num_cores


def _plan_tiles(n, d_pad, fc_dim, out_dim, x_bytes, w_bytes, vmem_budget, num_cores):
    """Pick (tn, n_pad, tk) so W_main is streamed over K in few, large tiles and
    the whole batch (per core) fits in one N tile whenever VMEM allows."""
    # --- K tile: largest 128-aligned divisor of d_pad whose double-buffered
    #     W_main tile + a reference-size x tile stay under ~50% of the budget.
    tn_ref = min(_round_up(max(n, 1), 8), 512)
    per_k_byte = 2 * w_bytes * fc_dim + 2 * x_bytes * tn_ref
    tk_cap = max(128, int(0.5 * vmem_budget) // per_k_byte)
    tk = _largest_aligned_divisor(d_pad, 128, tk_cap)

    # --- N tile: whole batch per core when it fits (W_main read from HBM once).
    fixed = (2 * tk * fc_dim * w_bytes          # W_main tile (double-buffered)
             + 2 * fc_dim * out_dim * w_bytes   # fused head weight
             + (64 << 10))                      # biases + slack
    per_row = 2 * tk * x_bytes + fc_dim * 4 + 2 * out_dim * 4
    tn_cap = max(8, int(0.8 * vmem_budget - fixed) // per_row)

    min_tiles = num_cores if (num_cores > 1 and n >= 8 * num_cores) else 1
    n_tiles = max(min_tiles, _cdiv(n, tn_cap))
    if n_tiles == 1:
        tn, n_pad = n, n            # full-batch tile -> no row padding needed
    else:
        tn = _round_up(_cdiv(n, n_tiles), 8)
        n_pad = _round_up(n, tn)
    return tn, n_pad, tk


def _novel_head_kernel(x_ref, wm_ref, bm_ref, wrc_ref, brc_ref, out_ref, acc_ref):
    """One N-row tile of the head; K (flattened feature dim) is the reduction axis."""
    k = pl.program_id(1)

    @pl.when(k == 0)
    def _():
        acc_ref[...] = jnp.zeros_like(acc_ref)

    # Stage 1 partial product: (tn, tk) @ (tk, fc_dim) -> f32 accumulator.
    # x is cast to the weight compute dtype (bf16) in-VMEM, on the fly.
    acc_ref[...] += jnp.dot(x_ref[...].astype(wm_ref.dtype), wm_ref[...],
                            preferred_element_type=jnp.float32)

    @pl.when(k == pl.num_programs(1) - 1)
    def _():
        # Finalize stage 1: bias + ReLU.
        main = jnp.maximum(acc_ref[...] + bm_ref[...], 0.0)
        # Fused stage 2: one lane-dense (tn, 2*sub_fc_dim) matmul for reg|cls.
        heads = jnp.dot(main.astype(wrc_ref.dtype), wrc_ref[...],
                        preferred_element_type=jnp.float32) + brc_ref[...]
        out_ref[...] = jnp.maximum(heads, 0.0).astype(out_ref.dtype)


def prepare_fast_rcnn_novel_head_params(w_main, b_main, w_reg, b_reg, w_cls, b_cls,
                                        *, compute_dtype=jnp.bfloat16):
    """One-time weight preparation (hoisted out of the per-call path).

    Weights are expected in (in, out) layout, i.e. transposed relative to
    PyTorch nn.Linear's (out, in) storage.  Biases may be (out,) or (1, out).
    """
    d, fc_dim = int(w_main.shape[0]), int(w_main.shape[1])
    sub = int(w_reg.shape[1])
    d_pad = _round_up(d, 128)

    wm = w_main.astype(compute_dtype)
    if d_pad != d:
        wm = jnp.zeros((d_pad, fc_dim), compute_dtype).at[:d, :].set(wm)

    w_rc = jnp.concatenate([w_reg, w_cls], axis=1).astype(compute_dtype)
    b_rc = jnp.concatenate(
        [b_reg.reshape(1, sub), b_cls.reshape(1, sub)], axis=1).astype(jnp.float32)
    b_m = b_main.reshape(1, fc_dim).astype(jnp.float32)

    return {"w_main": wm, "b_main": b_m, "w_rc": w_rc, "b_rc": b_rc,
            "d": d, "fc_dim": fc_dim, "sub_fc_dim": sub}


def fast_rcnn_novel_head_forward(x, params):
    """x: (N, C, H, W).  params: output of prepare_fast_rcnn_novel_head_params.

    Returns (loc_feat, cls_feat), each (N, sub_fc_dim) float32.
    """
    w_main = params["w_main"]          # (d_pad, fc_dim), compute dtype
    b_main = params["b_main"]          # (1, fc_dim) f32
    w_rc = params["w_rc"]              # (fc_dim, 2*sub) compute dtype
    b_rc = params["b_rc"]              # (1, 2*sub) f32
    d = params["d"]
    fc_dim = params["fc_dim"]
    sub = params["sub_fc_dim"]
    out_dim = 2 * sub
    d_pad = int(w_main.shape[0])

    n = int(x.shape[0])
    assert int(math.prod(x.shape[1:])) == d, "flattened feature dim mismatch"
    x_flat = x.reshape(n, d)

    x_bytes = jnp.dtype(x_flat.dtype).itemsize
    w_bytes = jnp.dtype(w_main.dtype).itemsize

    vmem_cap, num_cores = _tpu_generation_info()
    # ~40 MiB budget on 64-MiB-VMEM parts (v7x), ~88 MiB on 128-MiB parts.
    vmem_budget = (40 << 20) if vmem_cap <= (64 << 20) else (88 << 20)

    tn, n_pad, tk = _plan_tiles(n, d_pad, fc_dim, out_dim,
                                x_bytes, w_bytes, vmem_budget, num_cores)

    # Pad x only when unavoidable (D not a multiple of 128, or ragged N split).
    if n_pad != n or d_pad != d:
        x_in = jnp.zeros((n_pad, d_pad), x_flat.dtype).at[:n, :d].set(x_flat)
    else:
        x_in = x_flat

    n_tiles = n_pad // tn
    grid = (n_tiles, d_pad // tk)

    cost = pl.CostEstimate(
        flops=2 * n_pad * d_pad * fc_dim + 2 * n_pad * fc_dim * out_dim,
        transcendentals=0,
        bytes_accessed=(n_pad * d_pad * x_bytes
                        + n_tiles * d_pad * fc_dim * w_bytes   # W_main per N tile
                        + fc_dim * out_dim * w_bytes
                        + n_pad * out_dim * 4
                        + (fc_dim + out_dim) * 4),
    )

    grid_spec = pltpu.PrefetchScalarGridSpec(
        num_scalar_prefetch=0,
        grid=grid,
        in_specs=[
            pl.BlockSpec((tn, tk), lambda i, k: (i, k)),            # x tile
            pl.BlockSpec((tk, fc_dim), lambda i, k: (k, 0)),        # W_main (streamed over K)
            pl.BlockSpec((1, fc_dim), lambda i, k: (0, 0)),         # b_main (resident)
            pl.BlockSpec((fc_dim, out_dim), lambda i, k: (0, 0)),   # W_reg|W_cls fused
            pl.BlockSpec((1, out_dim), lambda i, k: (0, 0)),        # b_reg|b_cls fused
        ],
        out_specs=pl.BlockSpec((tn, out_dim), lambda i, k: (i, 0)),
        scratch_shapes=[pltpu.VMEM((tn, fc_dim), jnp.float32)],
    )

    fused = pl.pallas_call(
        _novel_head_kernel,
        out_shape=jax.ShapeDtypeStruct((n_pad, out_dim), jnp.float32),
        grid_spec=grid_spec,
        compiler_params=pltpu.CompilerParams(
            dimension_semantics=("parallel", "arbitrary"),
            vmem_limit_bytes=int(vmem_budget),
        ),
        cost_estimate=cost,
    )(x_in, w_main, b_main, w_rc, b_rc)

    loc_feat = fused[:n, :sub]
    cls_feat = fused[:n, sub:]
    return loc_feat, cls_feat


def _c2_xavier(key, fan_in, fan_out):
    # c2_xavier_fill: kaiming_uniform_(w, a=1) -> U(-bound, bound),
    # bound = sqrt(6 / ((1 + a^2) * fan_in)) = sqrt(3 / fan_in); bias = 0.
    bound = jnp.sqrt(3.0 / fan_in)
    w = jax.random.uniform(key, (fan_in, fan_out), jnp.float32, -bound, bound)
    b = jnp.zeros((1, fan_out), jnp.float32)
    return w, b


if __name__ == "__main__":
    # Small shapes consistent with the module: ROI box features (N, C, H, W).
    N, C, H, W = 2, 4, 16, 16           # flattened input dim = 1024
    FC_DIM = 128                        # cfg.MODEL.ROI_BOX_HEAD.FC_DIM
    SUB_FC_DIM = 64                     # cfg.MODEL.ROI_BOX_HEAD.SUB_FC_DIM

    key = jax.random.PRNGKey(0)
    kx, km, kr, kc = jax.random.split(key, 4)

    x = jax.random.normal(kx, (N, C, H, W), jnp.float32)

    in_dim = C * H * W
    w_main, b_main = _c2_xavier(km, in_dim, FC_DIM)
    w_reg, b_reg = _c2_xavier(kr, FC_DIM, SUB_FC_DIM)
    w_cls, b_cls = _c2_xavier(kc, FC_DIM, SUB_FC_DIM)

    # One-time weight prep (concat heads, bf16 cast, K-pad) — hoisted out of
    # the per-call forward path.
    params = prepare_fast_rcnn_novel_head_params(
        w_main, b_main, w_reg, b_reg, w_cls, b_cls)

    loc_feat, cls_feat = fast_rcnn_novel_head_forward(x, params)
    jax.block_until_ready((loc_feat, cls_feat))

    # Pure-JAX reference with the same bf16 compute / f32 accumulation recipe.
    bf16 = jnp.bfloat16
    x_flat = x.reshape(N, -1)
    main_ref = jnp.maximum(
        jnp.dot(x_flat.astype(bf16), w_main.astype(bf16),
                preferred_element_type=jnp.float32) + b_main, 0.0)
    loc_ref = jnp.maximum(
        jnp.dot(main_ref.astype(bf16), w_reg.astype(bf16),
                preferred_element_type=jnp.float32) + b_reg, 0.0)
    cls_ref = jnp.maximum(
        jnp.dot(main_ref.astype(bf16), w_cls.astype(bf16),
                preferred_element_type=jnp.float32) + b_cls, 0.0)

    assert loc_feat.shape == (N, SUB_FC_DIM) and cls_feat.shape == (N, SUB_FC_DIM)
    assert jnp.allclose(loc_feat, loc_ref, atol=1e-2, rtol=1e-2)
    assert jnp.allclose(cls_feat, cls_ref, atol=1e-2, rtol=1e-2)

    print("KERNEL_OK")
</pallas_src>

<mosaic_0001>
module attributes {stable_mosaic.version = 11 : i64} {
  func.func @_novel_head_kernel(%arg0: i32, %arg1: i32, %arg2: memref<2x1024xf32, #tpu.memory_space<vmem>>, %arg3: memref<1024x128xbf16, #tpu.memory_space<vmem>>, %arg4: memref<1x128xf32, #tpu.memory_space<vmem>>, %arg5: memref<128x128xbf16, #tpu.memory_space<vmem>>, %arg6: memref<1x128xf32, #tpu.memory_space<vmem>>, %arg7: memref<2x128xf32, #tpu.memory_space<vmem>>, %arg8: memref<2x128xf32, #tpu.memory_space<vmem>>) attributes {dimension_semantics = [#tpu.dimension_semantics<parallel>, #tpu.dimension_semantics<arbitrary>], iteration_bounds = array<i64: 1, 1>, scalar_prefetch = 0 : i64, scratch_operands = 1 : i64, tpu.core_type = #tpu.core_type<tc>, window_params = [{transform_indices = @transform_0, window_bounds = array<i64: 2, 1024>}, {transform_indices = @transform_1, window_bounds = array<i64: 1024, 128>}, {pipeline_mode = #tpu.pipeline_mode<synchronous>, transform_indices = @transform_2, window_bounds = array<i64: 1, 128>}, {pipeline_mode = #tpu.pipeline_mode<synchronous>, transform_indices = @transform_3, window_bounds = array<i64: 128, 128>}, {pipeline_mode = #tpu.pipeline_mode<synchronous>, transform_indices = @transform_4, window_bounds = array<i64: 1, 128>}, {transform_indices = @transform_5, window_bounds = array<i64: 2, 128>}]} {
    %c0_i32 = arith.constant 0 : i32
    %0 = arith.cmpi eq, %arg1, %c0_i32 : i32
    %1 = arith.extui %0 : i1 to i32
    %c0_i32_0 = arith.constant 0 : i32
    %2 = arith.cmpi ne, %1, %c0_i32_0 : i32
    scf.if %2 {
      %cst_10 = arith.constant 0.000000e+00 : f32
      %13 = vector.broadcast %cst_10 : f32 to vector<2x128xf32>
      %c0_11 = arith.constant 0 : index
      %c0_12 = arith.constant 0 : index
      %14 = vector.load %arg8[%c0_11, %c0_12] : memref<2x128xf32, #tpu.memory_space<vmem>>, vector<2x128xf32>
      tpu.vector_store %arg8[%c0_11, %c0_12], %13 {strides = array<i32>} : memref<2x128xf32, #tpu.memory_space<vmem>>, vector<2x128xf32>,
    } else {
    }
    %c0 = arith.constant 0 : index
    %c0_1 = arith.constant 0 : index
    %3 = vector.load %arg8[%c0, %c0_1] : memref<2x128xf32, #tpu.memory_space<vmem>>, vector<2x128xf32>
    %c0_2 = arith.constant 0 : index
    %c0_3 = arith.constant 0 : index
    %4 = vector.load %arg2[%c0_2, %c0_3] : memref<2x1024xf32, #tpu.memory_space<vmem>>, vector<2x1024xf32>
    %5 = arith.truncf %4 : vector<2x1024xf32> to vector<2x1024xbf16>
    %c0_4 = arith.constant 0 : index
    %c0_5 = arith.constant 0 : index
    %6 = vector.load %arg3[%c0_4, %c0_5] : memref<1024x128xbf16, #tpu.memory_space<vmem>>, vector<1024x128xbf16>
    %cst = arith.constant dense<0.000000e+00> : vector<2x128xf32>
    %7 = tpu.matmul %5, %6, %cst {dimension_numbers = #tpu.dot_dimension_numbers<[1], [0], [0], [1], [0, 0, 1, 1], [], []>} : vector<2x1024xbf16>, vector<1024x128xbf16>, vector<2x128xf32> -> vector<2x128xf32>
    %8 = arith.addf %3, %7 : vector<2x128xf32>
    %c0_6 = arith.constant 0 : index
    %c0_7 = arith.constant 0 : index
    %9 = vector.load %arg8[%c0_6, %c0_7] : memref<2x128xf32, #tpu.memory_space<vmem>>, vector<2x128xf32>
    tpu.vector_store %arg8[%c0_6, %c0_7], %8 {strides = array<i32>} : memref<2x128xf32, #tpu.memory_space<vmem>>, vector<2x128xf32>,
    %c0_i32_8 = arith.constant 0 : i32
    %10 = arith.cmpi eq, %arg1, %c0_i32_8 : i32
    %11 = arith.extui %10 : i1 to i32
    %c0_i32_9 = arith.constant 0 : i32
    %12 = arith.cmpi ne, %11, %c0_i32_9 : i32
    scf.if %12 {
      %c0_10 = arith.constant 0 : index
      %c0_11 = arith.constant 0 : index
      %13 = vector.load %arg8[%c0_10, %c0_11] : memref<2x128xf32, #tpu.memory_space<vmem>>, vector<2x128xf32>
      %c0_12 = arith.constant 0 : index
      %c0_13 = arith.constant 0 : index
      %14 = vector.load %arg4[%c0_12, %c0_13] : memref<1x128xf32, #tpu.memory_space<vmem>>, vector<1x128xf32>
      %15 = vector.broadcast %14 : vector<1x128xf32> to vector<2x128xf32>
      %16 = arith.addf %13, %15 : vector<2x128xf32>
      %cst_14 = arith.constant 0.000000e+00 : f32
      %17 = vector.broadcast %cst_14 : f32 to vector<2x128xf32>
      %18 = arith.maximumf %16, %17 : vector<2x128xf32>
      %19 = arith.truncf %18 : vector<2x128xf32> to vector<2x128xbf16>
      %c0_15 = arith.constant 0 : index
      %c0_16 = arith.constant 0 : index
      %20 = vector.load %arg5[%c0_15, %c0_16] : memref<128x128xbf16, #tpu.memory_space<vmem>>, vector<128x128xbf16>
      %cst_17 = arith.constant dense<0.000000e+00> : vector<2x128xf32>
      %21 = tpu.matmul %19, %20, %cst_17 {dimension_numbers = #tpu.dot_dimension_numbers<[1], [0], [0], [1], [0, 0, 1, 1], [], []>} : vector<2x128xbf16>, vector<128x128xbf16>, vector<2x128xf32> -> vector<2x128xf32>
      %c0_18 = arith.constant 0 : index
      %c0_19 = arith.constant 0 : index
      %22 = vector.load %arg6[%c0_18, %c0_19] : memref<1x128xf32, #tpu.memory_space<vmem>>, vector<1x128xf32>
      %23 = vector.broadcast %22 : vector<1x128xf32> to vector<2x128xf32>
      %24 = arith.addf %21, %23 : vector<2x128xf32>
      %cst_20 = arith.constant 0.000000e+00 : f32
      %25 = vector.broadcast %cst_20 : f32 to vector<2x128xf32>
      %26 = arith.maximumf %24, %25 : vector<2x128xf32>
      %c0_21 = arith.constant 0 : index
      %c0_22 = arith.constant 0 : index
      %27 = vector.load %arg7[%c0_21, %c0_22] : memref<2x128xf32, #tpu.memory_space<vmem>>, vector<2x128xf32>
      tpu.vector_store %arg7[%c0_21, %c0_22], %26 {strides = array<i32>} : memref<2x128xf32, #tpu.memory_space<vmem>>, vector<2x128xf32>,
    } else {
    }
    return
  }
  func.func @transform_0(%arg0: i32, %arg1: i32) -> (i32, i32) {
    %c0_i32 = arith.constant 0 : i32
    return %arg0, %arg1 : i32, i32
  }
  func.func @transform_1(%arg0: i32, %arg1: i32) -> (i32, i32) {
    %c0_i32 = arith.constant 0 : i32
    %c0_i32_0 = arith.constant 0 : i32
    return %arg1, %c0_i32 : i32, i32
  }
  func.func @transform_2(%arg0: i32, %arg1: i32) -> (i32, i32) {
    %c0_i32 = arith.constant 0 : i32
    %c0_i32_0 = arith.constant 0 : i32
    %c0_i32_1 = arith.constant 0 : i32
    return %c0_i32, %c0_i32_0 : i32, i32
  }
  func.func @transform_3(%arg0: i32, %arg1: i32) -> (i32, i32) {
    %c0_i32 = arith.constant 0 : i32
    %c0_i32_0 = arith.constant 0 : i32
    %c0_i32_1 = arith.constant 0 : i32
    return %c0_i32, %c0_i32_0 : i32, i32
  }
  func.func @transform_4(%arg0: i32, %arg1: i32) -> (i32, i32) {
    %c0_i32 = arith.constant 0 : i32
    %c0_i32_0 = arith.constant 0 : i32
    %c0_i32_1 = arith.constant 0 : i32
    return %c0_i32, %c0_i32_0 : i32, i32
  }
  func.func @transform_5(%arg0: i32, %arg1: i32) -> (i32, i32) {
    %c0_i32 = arith.constant 0 : i32
    %c0_i32_0 = arith.constant 0 : i32
    return %arg0, %c0_i32 : i32, i32
  }
}

</mosaic_0001>

<bundles_post_ra>
// kernel: tpu_custom_call.1
= control target key start
LH: loop header
LB: loop body
LE: loop exit
PB: predicated region body
PF: predicated region fallthrough
CT: control target
= control target key end

     0   :  { %10 = vsyncpa [#allocation4], 0  ;;  %s1497_s0 = inlined_call_operand.hbm [shape: f32[2,1024], index: 0, kind: input, shape index: {}]   ;;  %s1498_s1 = inlined_call_operand.hbm [shape: bf16[1024,128], index: 1, kind: input, shape index: {}]   ;;  %s1499_s2 = inlined_call_operand.hbm [shape: f32[1,128], index: 2, kind: input, shape index: {}]   ;;  %s1500_s3 = inlined_call_operand.hbm [shape: bf16[128,128], index: 3, kind: input, shape index: {}]   ;;  %s1501_s4 = inlined_call_operand.hbm [shape: f32[1,128], index: 4, kind: input, shape index: {}]   ;;  %s1502_s5 = inlined_call_operand.hbm [shape: f32[2,128], index: 5, kind: output, shape index: {}]  }
   0x1   :  { %11 = vsyncpa [#allocation7], 0 }
   0x2   :  { %12 = vsyncpa [#allocation10], 0 }
   0x3   :  { %13 = vsyncpa [#allocation5], 0  ;;  %s1378_s18 = smov [#allocation6]   ;;  %s1238_s22 = scalar_lea.hbm %s1498_s1, 8192 }
   0x4   :  { %s29_s19 = sshll.u32 %s1378_s18, 4  ;;  %p1239_p0 = scmp.ne.s32.totalorder %s1498_s1, %s1238_s22  ;;  %s30_s19 = int_to_ptr.vmem [resolvable:$true] %s29_s19 }
   0x5   :  { %p1242_p1 = scmp.lt.u32.totalorder %s1238_s22, %s1498_s1 }
   0x7   :  { %p1244_p2 = pnand %p1242_p1, %p1239_p0 }
   0x9   :  { %1247 = shalt.err (!%p1244_p2)
}
   0xa   :  { %s1248_s27 = scalar_lea.vmem %s30_s19, 8192  ;;  %p1253_p4 = scmp.lt.s32.totalorder %s30_s19, %s30_s19 }
   0xb   :  { %p1249_p3 = scmp.ne.s32.totalorder %s30_s19, %s1248_s27  ;;  %p1254_p5 = scmp.lt.s32.totalorder %s1248_s27, %s1248_s27 }
   0xd   :  { %p1255_p6 = por %p1254_p5, %p1253_p4 }
   0xf   :  { %p1256_p7 = pnand %p1255_p6, %p1249_p3 }
  0x11   :  { %1259 = shalt.err (!%p1256_p7)
}
  0x12   :  { %s1379_s28 = smov 64   ;;  %s1380_s29 = smov 4  }
  0x13   :  { %35 = dma.hbm_to_vmem [thread:$0]  %s1498_s1, 8192, %s30_s19, [#allocation7], %s1379_s28, %s1379_s28, %s1380_s29  }
  0x14   :  { %s1381_s7 = smov [#allocation9]   ;;  %s1382_s9 = smov [#allocation3]  }
  0x15   :  { %s51_s8 = sshll.u32 %s1381_s7, 4  ;;  %s20_s10 = sshll.u32 %s1382_s9, 4  ;;  %s52_s8 = int_to_ptr.vmem [resolvable:$true] %s51_s8  ;;  %s21_s10 = int_to_ptr.vmem [resolvable:$true] %s20_s10 }
  0x16   :  { %s1260_s13 = scalar_lea.hbm %s1500_s3, 1024 }
  0x17   :  { %p1261_p8 = scmp.ne.s32.totalorder %s1500_s3, %s1260_s13  ;;  %p1264_p9 = scmp.lt.u32.totalorder %s1260_s13, %s1500_s3 }
  0x19   :  { %p1266_p10 = pnand %p1264_p9, %p1261_p8 }
  0x1b   :  { %1269 = shalt.err (!%p1266_p10)
}
  0x1c   :  { %s1270_s1 = scalar_lea.vmem %s52_s8, 1024  ;;  %p1275_p12 = scmp.lt.s32.totalorder %s52_s8, %s52_s8 }
  0x1d   :  { %p1271_p11 = scmp.ne.s32.totalorder %s52_s8, %s1270_s1  ;;  %p1276_p13 = scmp.lt.s32.totalorder %s1270_s1, %s1270_s1 }
  0x1f   :  { %p1277_p0 = por %p1276_p13, %p1275_p12 }
  0x21   :  { %p1278_p1 = pnand %p1277_p0, %p1271_p11 }
  0x23   :  { %1281 = shalt.err (!%p1278_p1)
}
  0x24   :  { %57 = dma.hbm_to_vmem [thread:$0]  %s1500_s3, 1024, %s52_s8, [#allocation10], %s1379_s28, %s1379_s28, %s1380_s29  }
  0x25   :  { %s1282_s22 = scalar_lea.hbm %s1497_s0, 256 }
  0x26   :  { %p1283_p2 = scmp.ne.s32.totalorder %s1497_s0, %s1282_s22  ;;  %p1286_p3 = scmp.lt.u32.totalorder %s1282_s22, %s1497_s0 }
  0x28   :  { %p1288_p4 = pnand %p1286_p3, %p1283_p2 }
  0x2a   :  { %1291 = shalt.err (!%p1288_p4)
}
  0x2b   :  { %s1292_s27 = scalar_lea.vmem %s21_s10, 256  ;;  %p1297_p6 = scmp.lt.s32.totalorder %s21_s10, %s21_s10 }
  0x2c   :  { %p1293_p5 = scmp.ne.s32.totalorder %s21_s10, %s1292_s27  ;;  %p1298_p7 = scmp.lt.s32.totalorder %s1292_s27, %s1292_s27 }
  0x2e   :  { %p1299_p8 = por %p1298_p7, %p1297_p6 }
  0x30   :  { %p1300_p9 = pnand %p1299_p8, %p1293_p5 }
  0x32   :  { %1303 = shalt.err (!%p1300_p9)
}
  0x33   :  { %23 = dma.hbm_to_vmem [thread:$0]  %s1497_s0, 256, %s21_s10, [#allocation4]  }
  0x34   :  { %s1383_s29 = smov [#allocation8]   ;;  %s1384_s6 = smov [#allocation11]  }
  0x35   :  { %s42_s30 = sshll.u32 %s1383_s29, 4  ;;  %s64_s7 = sshll.u32 %s1384_s6, 4  ;;  %s43_s30 = int_to_ptr.vmem [resolvable:$true] %s42_s30  ;;  %s65_s7 = int_to_ptr.vmem [resolvable:$true] %s64_s7 }
  0x36   :  { %s1304_s11 = scalar_lea.hbm %s1499_s2, 16 }
  0x37   :  { %p1305_p10 = scmp.ne.s32.totalorder %s1499_s2, %s1304_s11  ;;  %p1308_p11 = scmp.lt.u32.totalorder %s1304_s11, %s1499_s2 }
  0x39   :  { %p1310_p12 = pnand %p1308_p11, %p1305_p10 }
  0x3b   :  { %1313 = shalt.err (!%p1310_p12)
}
  0x3c   :  { %s1314_s0 = scalar_lea.vmem %s43_s30, 16  ;;  %s1318_s10 = scalar_lea.vmem %s43_s30, 32 }
  0x3d   :  { %p1315_p13 = scmp.ne.s32.totalorder %s43_s30, %s1314_s0  ;;  %p1319_p0 = scmp.lt.s32.totalorder %s43_s30, %s43_s30 }
  0x3e   :  { %p1320_p1 = scmp.lt.s32.totalorder %s1318_s10, %s1314_s0 }
  0x40   :  { %p1321_p2 = por %p1320_p1, %p1319_p0 }
  0x42   :  { %p1322_p3 = pnand %p1321_p2, %p1315_p13 }
  0x44   :  { %1325 = shalt.err (!%p1322_p3)
}
  0x45   :  { %45 = dma.hbm_to_vmem [thread:$0]  %s1499_s2, 16, %s43_s30, [#allocation7]  }
  0x46   :  { %s1326_s19 = scalar_lea.hbm %s1501_s4, 16 }
  0x47   :  { %p1327_p4 = scmp.ne.s32.totalorder %s1501_s4, %s1326_s19  ;;  %p1330_p5 = scmp.lt.u32.totalorder %s1326_s19, %s1501_s4 }
  0x49   :  { %p1332_p6 = pnand %p1330_p5, %p1327_p4 }
  0x4b   :  { %1335 = shalt.err (!%p1332_p6)
}
  0x4c   :  { %s1336_s24 = scalar_lea.vmem %s65_s7, 16  ;;  %s1340_s25 = scalar_lea.vmem %s65_s7, 32 }
  0x4d   :  { %p1337_p7 = scmp.ne.s32.totalorder %s65_s7, %s1336_s24  ;;  %p1341_p8 = scmp.lt.s32.totalorder %s65_s7, %s65_s7 }
  0x4e   :  { %p1342_p9 = scmp.lt.s32.totalorder %s1340_s25, %s1336_s24 }
  0x50   :  { %p1343_p10 = por %p1342_p9, %p1341_p8 }
  0x52   :  { %p1344_p11 = pnand %p1343_p10, %p1337_p7 }
  0x54   :  { %1347 = shalt.err (!%p1344_p11)
}
  0x55   :  { %67 = dma.hbm_to_vmem [thread:$0]  %s1501_s4, 16, %s65_s7, [#allocation10]  }
  0x56   :  { %1370 = dma.done.wait [#allocation4], 256  }
  0x57   :  { %1371 = vsyncadd [#allocation4], 4294967040 }
  0x58   :  { %1372 = dma.done.wait [#allocation7], 8208  }
  0x59   :  { %1373 = vsyncadd [#allocation7], 4294959088 }
  0x5a   :  { %1374 = dma.done.wait [#allocation10], 1040  }
  0x5b   :  { %1375 = vsyncadd [#allocation10], 4294966256  ;;  %v1164_v0 = vld [vmem:[#allocation6 + $0x40] sm:$0xff]   ;;  %v1168_v4 = vld [vmem:[#allocation6 + $0x48] sm:$0xff]   ;;  %v1385_v22 = vmov 1983009808   ;;  %v98_v24 = vlaneseq }
  0x5c   :  { %v1165_v1 = vld [vmem:[#allocation6 + $0xc0] sm:$0xff]   ;;  %1036 = vmatprep.subr.bf16.mxu0 %v1164_v0  ;;  %v1169_v5 = vld [vmem:[#allocation6 + $0xc8] sm:$0xff]   ;;  %v1172_v8 = vld [vmem:[#allocation6 + $0x50] sm:$0xff]   ;;  %v96_v23 = vunpack.c.l.s4 %v1385_v22  ;;  %vm1387_vm0 = vmmov 0   ;;  %s1388_s4 = smov [#allocation12]  }
  0x5d   :  { %v1166_v2 = vld [vmem:[#allocation6] sm:$0xff]   ;;  %1058 = vmatprep.subr.bf16.mxu1 %v1165_v1  ;;  %v1170_v6 = vld [vmem:[#allocation6 + $0x8] sm:$0xff]   ;;  %v1173_v9 = vld [vmem:[#allocation6 + $0xd0] sm:$0xff]   ;;  %v99_v30 = vshrl.u32 %v98_v24, 7  ;;  %s951_s27 = sshll.u32 %s1388_s4, 4  ;;  %s952_s27 = int_to_ptr.vmem [resolvable:$true] %s951_s27 }
  0x5e   :  { %v1167_v3 = vld [vmem:[#allocation6 + $0x80] sm:$0xff]   ;;  %1037 = vmatpush3.bf16.msra.mxu0 %v1166_v2  ;;  %v1171_v7 = vld [vmem:[#allocation6 + $0x88] sm:$0xff]   ;;  %v1174_v10 = vld [vmem:[#allocation6 + $0x10] sm:$0xff]   ;;  %v97_v29 = vunpack.c.0.s8 %v96_v23  ;;  %s1348_s3 = scalar_lea.vmem %s952_s27, 32  ;;  %p1353_p13 = scmp.lt.s32.totalorder %s952_s27, %s952_s27 }
  0x5f   :  { %1059 = vmatpush3.bf16.msra.mxu1 %v1167_v3  ;;  %1038 = vmatprep.subr.bf16.mxu0 %v1168_v4  ;;  %v1175_v11 = vld [vmem:[#allocation6 + $0x90] sm:$0xff]   ;;  %v1176_v12 = vld [vmem:[#allocation6 + $0x58] sm:$0xff]   ;;  %v1180_v16 = vld [vmem:[#allocation6 + $0x60] sm:$0xff]   ;;  %p1349_p12 = scmp.ne.s32.totalorder %s952_s27, %s1348_s3  ;;  %p1354_p0 = scmp.lt.s32.totalorder %s1348_s3, %s1348_s3 }
  0x60   :  { %1060 = vmatprep.subr.bf16.mxu1 %v1169_v5  ;;  %v1177_v13 = vld [vmem:[#allocation6 + $0xd8] sm:$0xff]   ;;  %v1181_v17 = vld [vmem:[#allocation6 + $0xe0] sm:$0xff]   ;;  %v1184_v20 = vld [vmem:[#allocation6 + $0x68] sm:$0xff]   ;;  %v1479_v35 = vsub.s32 %v97_v29, %v99_v30 }
  0x61   :  { %v1178_v14 = vld [vmem:[#allocation6 + $0x18] sm:$0xff]   ;;  %v1182_v18 = vld [vmem:[#allocation6 + $0x20] sm:$0xff]   ;;  %v1185_v21 = vld [vmem:[#allocation6 + $0xe8] sm:$0xff]   ;;  %p1355_p1 = por %p1354_p0, %p1353_p13 }
  0x62   :  { %1039 = vmatpush3.bf16.msra.mxu0 %v1170_v6  ;;  %v1179_v15 = vld [vmem:[#allocation6 + $0x98] sm:$0xff]   ;;  %v1183_v19 = vld [vmem:[#allocation6 + $0xa0] sm:$0xff]   ;;  %v1186_v25 = vld [vmem:[#allocation6 + $0x28] sm:$0xff]  }
  0x63   :  { %1061 = vmatpush3.bf16.msra.mxu1 %v1171_v7  ;;  %1040 = vmatprep.subr.bf16.mxu0 %v1172_v8  ;;  %v1187_v26 = vld [vmem:[#allocation6 + $0xa8] sm:$0xff]   ;;  %v1188_v27 = vld [vmem:[#allocation6 + $0x70] sm:$0xff]   ;;  %v1192_v33 = vld [vmem:[#allocation6 + $0x78] sm:$0xff]   ;;  %p1356_p2 = pnand %p1355_p1, %p1349_p12 }
  0x64   :  { %1062 = vmatprep.subr.bf16.mxu1 %v1173_v9  ;;  %v1189_v28 = vld [vmem:[#allocation6 + $0xf0] sm:$0xff]   ;;  %v1193_v34 = vld [vmem:[#allocation6 + $0xf8] sm:$0xff]   ;;  %v1197_v41 = vld [vmem:[#allocation6 + $0x140] sm:$0xff]  }
  0x65   :  { %v1190_v31 = vld [vmem:[#allocation6 + $0x30] sm:$0xff]   ;;  %v1194_v36 = vld [vmem:[#allocation6 + $0x38] sm:$0xff]   ;;  %v1198_v42 = vld [vmem:[#allocation6 + $0x1c0] sm:$0xff]  }
  0x66   :  { %1041 = vmatpush3.bf16.msra.mxu0 %v1174_v10  ;;  %v1191_v32 = vld [vmem:[#allocation6 + $0xb0] sm:$0xff]   ;;  %v1195_v37 = vld [vmem:[#allocation6 + $0xb8] sm:$0xff]   ;;  %v1199_v46 = vld [vmem:[#allocation6 + $0x100] sm:$0xff]  }
  0x67   :  { %1063 = vmatpush3.bf16.msra.mxu1 %v1175_v11  ;;  %1042 = vmatprep.subr.bf16.mxu0 %v1176_v12  ;;  %v90_v38 = vld [vmem:[#allocation3] sm:$0xff]  ;;  %v1200_v49 = vld [vmem:[#allocation6 + $0x180] sm:$0xff]   ;;  %v1201_v51 = vld [vmem:[#allocation6 + $0x148] sm:$0xff]  }
  0x68   :  { %1064 = vmatprep.subr.bf16.mxu1 %v1177_v13  ;;  %v101_v39 = vrot.slane %v90_v38, %v1479_v35  ;;  %v94_v40 = vcombine.high %v90_v38, %v90_v38  ;;  %v1202_v53 = vld [vmem:[#allocation6 + $0x1c8] sm:$0xff]   ;;  %v1205_v56 = vld [vmem:[#allocation6 + $0x150] sm:$0xff]   ;;  %v1209_v60 = vld [vmem:[#allocation6 + $0x158] sm:$0xff]  }
  0x69   :  { %v1203_v54 = vld [vmem:[#allocation6 + $0x108] sm:$0xff]   ;;  %v1206_v57 = vld [vmem:[#allocation6 + $0x1d0] sm:$0xff]   ;;  %v1210_v61 = vld [vmem:[#allocation6 + $0x1d8] sm:$0xff]  }
  0x6a   :  { %1043 = vmatpush3.bf16.msra.mxu0 %v1178_v14  ;;  %v109_v43 = vcombine.high %v101_v39, %v101_v39  ;;  %v108_v44 = vrot.slane %v94_v40, %v1479_v35  ;;  %v136_v45 = vpack.c.bf16 %v101_v39, %v101_v39  ;;  %v1204_v55 = vld [vmem:[#allocation6 + $0x188] sm:$0xff]   ;;  %v1207_v58 = vld [vmem:[#allocation6 + $0x110] sm:$0xff]   ;;  %v1211_v62 = vld [vmem:[#allocation6 + $0x118] sm:$0xff]  }
  0x6b   :  { %1065 = vmatpush3.bf16.msra.mxu1 %v1179_v15  ;;  %1044 = vmatprep.subr.bf16.mxu0 %v1180_v16  ;;  %v1208_v59 = vld [vmem:[#allocation6 + $0x190] sm:$0xff]   ;;  %v1212_v63 = vld [vmem:[#allocation6 + $0x198] sm:$0xff]   ;;  %v1213_v0 = vld [vmem:[#allocation6 + $0x160] sm:$0xff]  }
  0x6c   :  { %1066 = vmatprep.subr.bf16.mxu1 %v1181_v17  ;;  %v137_v47 = vpack.c.bf16 %v109_v43, %v109_v43  ;;  %v110_v48 = vcombine.high %v108_v44, %v108_v44  ;;  %v138_v50 = vpack.c.bf16 %v108_v44, %v108_v44  ;;  %v1214_v1 = vld [vmem:[#allocation6 + $0x1e0] sm:$0xff]   ;;  %v1217_v4 = vld [vmem:[#allocation6 + $0x168] sm:$0xff]   ;;  %v1221_v8 = vld [vmem:[#allocation6 + $0x170] sm:$0xff]  }
  0x6d   :  { %v1215_v2 = vld [vmem:[#allocation6 + $0x120] sm:$0xff]   ;;  %v1218_v5 = vld [vmem:[#allocation6 + $0x1e8] sm:$0xff]   ;;  %v1222_v9 = vld [vmem:[#allocation6 + $0x1f0] sm:$0xff]  }
  0x6e   :  { %1045 = vmatpush3.bf16.msra.mxu0 %v1182_v18  ;;  %688 = vmatprep.mubr.bf16.mxu0 %v137_v47  ;;  %v139_v52 = vpack.c.bf16 %v110_v48, %v110_v48  ;;  %v1216_v3 = vld [vmem:[#allocation6 + $0x1a0] sm:$0xff]   ;;  %v1219_v6 = vld [vmem:[#allocation6 + $0x128] sm:$0xff]   ;;  %v1223_v10 = vld [vmem:[#allocation6 + $0x130] sm:$0xff]  }
  0x6f   :  { %1067 = vmatpush3.bf16.msra.mxu1 %v1183_v19  ;;  %1046 = vmatprep.subr.bf16.mxu0 %v1184_v20  ;;  %v1220_v7 = vld [vmem:[#allocation6 + $0x1a8] sm:$0xff]   ;;  %v1224_v11 = vld [vmem:[#allocation6 + $0x1b0] sm:$0xff]   ;;  %v1225_v12 = vld [vmem:[#allocation6 + $0x178] sm:$0xff]  }
  0x70   :  { %1068 = vmatprep.subr.bf16.mxu1 %v1185_v21  ;;  %728 = vmatprep.mubr.bf16.mxu1 %v139_v52  ;;  %v1226_v13 = vld [vmem:[#allocation6 + $0x1f8] sm:$0xff]  }
  0x71   :  { %v1227_v14 = vld [vmem:[#allocation6 + $0x138] sm:$0xff]  }
  0x72   :  { %1047 = vmatpush3.bf16.msra.mxu0 %v1186_v25  ;;  %v91_v15 = vld [vmem:[#allocation3 + $0x8] sm:$0xff] }
  0x73   :  { %1069 = vmatpush3.bf16.msra.mxu1 %v1187_v26  ;;  %1048 = vmatprep.subr.bf16.mxu0 %v1188_v27  ;;  %v1228_v16 = vld [vmem:[#allocation6 + $0x1b8] sm:$0xff]   ;;  %v118_v17 = vrot.slane %v91_v15, %v1479_v35  ;;  %v111_v18 = vcombine.high %v91_v15, %v91_v15  ;;  %v1230_v26 = vld [vmem:[#allocation9] sm:$0xff]   ;;  %v1386_v27 = vmov 0.0  }
  0x74   :  { %1070 = vmatprep.subr.bf16.mxu1 %v1189_v28  ;;  %88 = vst [vmem:[#allocation2] sm:$0x3] %v1386_v27  ;;  %v1231_v28 = vld [vmem:[#allocation9 + $0x8] sm:$0xff]   ;;  %v1232_v29 = vld [vmem:[#allocation9 + $0x10] sm:$0xff]   ;;  %v1233_v30 = vld [vmem:[#allocation9 + $0x18] sm:$0xff]  }
  0x75   :  { %v126_v19 = vcombine.high %v118_v17, %v118_v17  ;;  %v125_v20 = vrot.slane %v111_v18, %v1479_v35  ;;  %v140_v21 = vpack.c.bf16 %v118_v17, %v118_v17 }
  0x76   :  { %1049 = vmatpush3.bf16.msra.mxu0 %v1190_v31  ;;  %v1234_v31 = vld [vmem:[#allocation9 + $0x20] sm:$0xff]  }
  0x77   :  { %1071 = vmatpush3.bf16.msra.mxu1 %v1191_v32  ;;  %1050 = vmatprep.subr.bf16.mxu0 %v1192_v33  ;;  %v141_v22 = vpack.c.bf16 %v126_v19, %v126_v19  ;;  %v127_v23 = vcombine.high %v125_v20, %v125_v20  ;;  %v142_v24 = vpack.c.bf16 %v125_v20, %v125_v20  ;;  %v1235_v32 = vld [vmem:[#allocation9 + $0x28] sm:$0xff]   ;;  %v1236_v33 = vld [vmem:[#allocation9 + $0x30] sm:$0xff]  }
  0x78   :  { %1072 = vmatprep.subr.bf16.mxu1 %v1193_v34  ;;  %v1237_v34 = vld [vmem:[#allocation9 + $0x38] sm:$0xff]  }
  0x79   :  { %v143_v25 = vpack.c.bf16 %v127_v23, %v127_v23 }
  0x7a   :  { %1051 = vmatpush3.bf16.msra.mxu0 %v1194_v36 }
  0x7b   :  { %1073 = vmatpush3.bf16.msra.mxu1 %v1195_v37  ;;  %1080 = vmatprep.subr.bf16.mxu0 %v1197_v41 }
  0x7c   :  { %1102 = vmatprep.subr.bf16.mxu1 %v1198_v42 }
  0x7d   :  { %689 = vmatmul.mubr.bf16.vlgmr.msra.gmra.mrb[0].mxu0 %v136_v45 }
  0x7e   :  { %1081 = vmatpush3.bf16.msra.mxu0 %v1199_v46  ;;  %729 = vmatmul.mubr.bf16.vlgmr.msra.gmra.mrb[0].mxu1 %v138_v50 }
  0x7f   :  { %1082 = vmatprep.subr.bf16.mxu0 %v1201_v51  ;;  %1103 = vmatpush3.bf16.msra.mxu1 %v1200_v49 }
  0x80   :  { %1104 = vmatprep.subr.bf16.mxu1 %v1202_v53  ;;  %768 = vmatprep.mubr.bf16.mxu0 %v141_v22 }
  0x81   :  { %808 = vmatprep.mubr.bf16.mxu1 %v143_v25 }
  0x82   :  { %1083 = vmatpush3.bf16.msra.mxu0 %v1203_v54 }
  0x83   :  { %1084 = vmatprep.subr.bf16.mxu0 %v1205_v56  ;;  %1105 = vmatpush3.bf16.msra.mxu1 %v1204_v55  ;;  %v89_v56 = vld [vmem:[#allocation2] sm:$0x3] }
  0x84   :  { %1106 = vmatprep.subr.bf16.mxu1 %v1206_v57 }
  0x86   :  { %1085 = vmatpush3.bf16.msra.mxu0 %v1207_v58 }
  0x87   :  { %1086 = vmatprep.subr.bf16.mxu0 %v1209_v60  ;;  %1107 = vmatpush3.bf16.msra.mxu1 %v1208_v59  ;;  %v1026_v60 = vld [vmem:[#allocation8] ss:$0 sm:$0xff] }
  0x88   :  { %1108 = vmatprep.subr.bf16.mxu1 %v1210_v61 }
  0x8a   :  { %1087 = vmatpush3.bf16.msra.mxu0 %v1211_v62 }
  0x8b   :  { %1088 = vmatprep.subr.bf16.mxu0 %v1213_v0  ;;  %1109 = vmatpush3.bf16.msra.mxu1 %v1212_v63 }
  0x8c   :  { %1110 = vmatprep.subr.bf16.mxu1 %v1214_v1  ;;  %v1027_v1 = vld [vmem:[#allocation11] ss:$0 sm:$0xff] }
  0x8e   :  { %1089 = vmatpush3.bf16.msra.mxu0 %v1215_v2 }
  0x8f   :  { %1090 = vmatprep.subr.bf16.mxu0 %v1217_v4  ;;  %1111 = vmatpush3.bf16.msra.mxu1 %v1216_v3 }
  0x90   :  { %1112 = vmatprep.subr.bf16.mxu1 %v1218_v5 }
  0x92   :  { %1091 = vmatpush3.bf16.msra.mxu0 %v1219_v6 }
  0x93   :  { %1092 = vmatprep.subr.bf16.mxu0 %v1221_v8  ;;  %1113 = vmatpush3.bf16.msra.mxu1 %v1220_v7 }
  0x94   :  { %1114 = vmatprep.subr.bf16.mxu1 %v1222_v9 }
  0x96   :  { %1093 = vmatpush3.bf16.msra.mxu0 %v1223_v10 }
  0x97   :  { %1094 = vmatprep.subr.bf16.mxu0 %v1225_v12  ;;  %1115 = vmatpush3.bf16.msra.mxu1 %v1224_v11 }
  0x98   :  { %1116 = vmatprep.subr.bf16.mxu1 %v1226_v13 }
  0x9a   :  { %1095 = vmatpush3.bf16.msra.mxu0 %v1227_v14 }
  0x9b   :  { %1117 = vmatpush3.bf16.msra.mxu1 %v1228_v16  ;;  %1133 = vmatprep.subr.bf16.mxu0 %v1386_v27 }
  0x9d   :  { %769 = vmatmul.mubr.bf16.vlgmr.msra.gmra.mrb[4].mxu0 %v140_v21 }
  0x9e   :  { %809 = vmatmul.mubr.bf16.vlgmr.msra.gmra.mrb[4].mxu1 %v142_v24  ;;  %1134 = vmatpush3.bf16.msra.mxu0 %v1230_v26 }
  0x9f   :  { %1135 = vmatprep.subr.bf16.mxu0 %v1386_v27  ;;  %1149 = vmatprep.mubr.msk.bf16.mxu0 %vm1387_vm0, %v1386_v27 }
  0xa2   :  { %1136 = vmatpush3.bf16.msra.mxu0 %v1231_v28 }
  0xa3   :  { %1137 = vmatprep.subr.bf16.mxu0 %v1386_v27 }
  0xa6   :  { %1138 = vmatpush3.bf16.msra.mxu0 %v1232_v29 }
  0xa7   :  { %1139 = vmatprep.subr.bf16.mxu0 %v1386_v27 }
  0xaa   :  { %1140 = vmatpush3.bf16.msra.mxu0 %v1233_v30 }
  0xab   :  { %1141 = vmatprep.subr.bf16.mxu0 %v1386_v27 }
  0xae   :  { %1142 = vmatpush3.bf16.msra.mxu0 %v1234_v31 }
  0xaf   :  { %1143 = vmatprep.subr.bf16.mxu0 %v1386_v27 }
  0xb2   :  { %1144 = vmatpush3.bf16.msra.mxu0 %v1235_v32 }
  0xb3   :  { %1145 = vmatprep.subr.bf16.mxu0 %v1386_v27 }
  0xb6   :  { %1146 = vmatpush3.bf16.msra.mxu0 %v1236_v33 }
  0xb7   :  { %1147 = vmatprep.subr.bf16.mxu0 %v1386_v27 }
  0xba   :  { %1148 = vmatpush3.bf16.msra.mxu0 %v1237_v34 }
 0x150   :  { %v1052_v35 = vpop.f32.mrb[0].mxu0 }
 0x151   :  { %v1053_v36 = vpop.f32.mrb[1].mxu0  ;;  %v1074_v37 = vpop.f32.mrb[0].mxu1 }
 0x152   :  { %v1054_v38 = vadd.f32 %v1053_v36, %v1052_v35  ;;  %v1055_v39 = vpop.f32.mrb[2].mxu0  ;;  %v1075_v40 = vpop.f32.mrb[1].mxu1 }
 0x153   :  { %v1056_v41 = vpop.f32.mrb[3].mxu0  ;;  %v1076_v42 = vadd.f32 %v1075_v40, %v1074_v37  ;;  %v1077_v43 = vpop.f32.mrb[2].mxu1 }
 0x154   :  { %v1078_v44 = vpop.f32.mrb[3].mxu1 }
 0x155   :  { %v731_v45 = vadd.f32 %v1076_v42, %v1054_v38 }
 0x170   :  { %v1096_v46 = vpop.f32.mrb[4].mxu0 }
 0x171   :  { %v1097_v47 = vpop.f32.mrb[5].mxu0  ;;  %v1118_v48 = vpop.f32.mrb[4].mxu1 }
 0x172   :  { %v1098_v49 = vadd.f32 %v1097_v47, %v1096_v46  ;;  %v1099_v50 = vpop.f32.mrb[6].mxu0  ;;  %v1119_v51 = vpop.f32.mrb[5].mxu1 }
 0x173   :  { %v1100_v52 = vpop.f32.mrb[7].mxu0  ;;  %v1120_v54 = vadd.f32 %v1119_v51, %v1118_v48  ;;  %v1121_v55 = vpop.f32.mrb[6].mxu1 }
 0x174   :  { %v771_v53 = vadd.f32 %v1098_v49, %v731_v45  ;;  %v1122_v57 = vpop.f32.mrb[7].mxu1 }
 0x176   :  { %v811_v58 = vadd.f32 %v1120_v54, %v771_v53 }
 0x178   :  { %v816_v59 = vadd.f32 %v811_v58, %v89_v56 }
 0x17a   :  { %817 = vst [vmem:[#allocation2] sm:$0x3] %v816_v59 }
 0x181   :  { %v821_v61 = vld [vmem:[#allocation2] sm:$0x3] }
 0x182   :  { %v829_v62 = vadd.f32 %v1026_v60, %v821_v61 }
 0x184   :  { %v830_v63 = vmax.f32 %v829_v62, 0.0 }
 0x186   :  { %v831_v0 = vpack.c.bf16 %v830_v63, %v830_v63 }
 0x188   :  { %1150 = vmatmul.mubr.bf16.vlgmr.msra.gmra.mrb[8].mxu0 %v831_v0 }
 0x25b   :  { %v937_v2 = vpop.f32.mrb[8].mxu0 }
 0x25c   :  { %v938_v3 = vadd.f32 %v1027_v1, %v937_v2  ;;  %v1151_v4 = vpop.f32.mrb[9].mxu0 }
 0x25d   :  { %v940_v5 = vpop.f32.mrb[10].mxu0 }
 0x25e   :  { %v943_v6 = vmax.f32 %v938_v3, 0.0  ;;  %v1152_v7 = vpop.f32.mrb[11].mxu0 }
 0x260   :  { %944 = vst [vmem:[#allocation12] sm:$0x3] %v943_v6 }
 0x261   :  { %1359 = shalt.err (!%p1356_p2)
}
 0x262   :  { %s1360_s30 = scalar_lea.hbm %s1502_s5, 32 }
 0x263   :  { %p1361_p3 = scmp.ne.s32.totalorder %s1502_s5, %s1360_s30  ;;  %p1364_p4 = scmp.lt.u32.totalorder %s1360_s30, %s1502_s5 }
 0x265   :  { %p1366_p5 = pnand %p1364_p4, %p1361_p3 }
 0x267   :  { %1369 = shalt.err (!%p1366_p5)
}
 0x268   :  { %954 = dma.vmem_to_hbm [thread:$0]  %s952_s27, 32, %s1502_s5, [#allocation5]  }
 0x269   :  { %1376 = dma.done.wait [#allocation5], 32  }
 0x26a   :  { %1377 = vsyncadd [#allocation5], 4294967264 }
 0x26b   :  { %958 = vsyncpa [#allocation4], 1 }
 0x26c   :  { %959 = vsyncpa [#allocation7], 1 }
 0x26d   :  { %960 = vsyncpa [#allocation10], 1 }
 0x26e   :  { %961 = vsyncpa [#allocation5], 1 }

</bundles_post_ra>
